<compile_context>
chip_gen: v7x
topology: tpu7x:2x2x1
jax: 0.10.0
libtpu: 0.0.40
codegen_flags: <defaults>
</compile_context>

<pallas_src>
import functools

import jax
import jax.numpy as jnp
from jax.experimental import pallas as pl
from jax.experimental.pallas import tpu as pltpu


_LANES = 128
_MAX_TILE_N = 4096        # caps the (tile_n, 128) f32 lane-partial accumulator at 2 MiB
_MAX_TILE_F = 4096        # caps the static lane-group unroll at 32 groups


def _round_up(x, m):
    return ((x + m - 1) // m) * m


def _per_block_byte_budget():
    """Device-aware byte budget for one (double-buffered) input block."""
    try:
        vmem_cap = int(pltpu.get_tpu_info().vmem_capacity_bytes)
    except Exception:
        vmem_cap = 64 * 1024 * 1024                    # conservative fallback (v7x per-TC VMEM)
    usable = vmem_cap * 3 // 4                          # headroom for Mosaic internal scratch
    # Two double-buffered input blocks + accumulator scratch + outputs must fit.
    return max(1 * 1024 * 1024,
               min(16 * 1024 * 1024, (usable - 6 * 1024 * 1024) // 2))


def _select_tiles(n_rows, n_feat_lanes, itemsize, block_budget):
    """Byte-budgeted (tile_n, tile_f): full-width feature tiles when they fit, large
    sublane-aligned row tiles, and >= 2 row tiles so v7x megacore uses both cores."""
    row_align = max(8, 32 // itemsize)                  # 8 (f32) / 16 (bf16) / 32 (int8)

    # Feature tile: prefer the full lane-padded width (single contiguous DMA per block and
    # the reduction grid axis collapses); otherwise split into near-equal lane-aligned chunks.
    cap_f = min(_MAX_TILE_F,
                max(_LANES, (block_budget // (row_align * itemsize)) // _LANES * _LANES))
    if n_feat_lanes <= cap_f:
        tile_f = n_feat_lanes
    else:
        steps = -(-n_feat_lanes // cap_f)               # cdiv
        tile_f = _round_up(-(-n_feat_lanes // steps), _LANES)

    # Row tile: as many rows as the byte budget allows.
    if n_rows <= row_align:
        return n_rows, tile_f                           # single block == full row dim
    rows_aligned = _round_up(n_rows, row_align)
    cap_n = min(_MAX_TILE_N,
                max(row_align, (block_budget // (tile_f * itemsize)) // row_align * row_align),
                rows_aligned)
    if cap_n >= rows_aligned and rows_aligned >= 2 * row_align:
        cap_n = rows_aligned // 2                       # >= 2 tiles on the parallel row axis (v7x)
    tile_n = max(row_align, cap_n - cap_n % row_align)
    if rows_aligned % tile_n != 0:
        # Prefer a slightly smaller row tile that divides the row count (skips the padding
        # copy in the wrapper); don't shrink blocks below ~1/4 of the budgeted size.
        floor = max(row_align, tile_n // 4)
        for cand in range(tile_n - row_align, floor - 1, -row_align):
            if rows_aligned % cand == 0:
                tile_n = cand
                break
    return tile_n, tile_f


def _row_sq_norm_kernel(f_ref, out_ref, ssq_ref, *, lane_groups: int):
    """Accumulate per-row sum-of-squares over feature tiles; emit per-row L2 norms."""
    k = pl.program_id(1)                                # feature (reduction) axis -- innermost

    @pl.when(k == 0)
    def _():
        ssq_ref[...] = jnp.zeros_like(ssq_ref)

    # Per-lane-group load + f32 cast + square, accumulated straight into the VMEM accumulator:
    # vreg pressure stays at ~one group regardless of tile size (no spills, no full-tile f32
    # materialization); the extra VMEM ld/st ride in load/store slots that are otherwise idle
    # in this HBM-bound loop.
    for g in range(lane_groups):
        xg = f_ref[:, g * _LANES:(g + 1) * _LANES].astype(jnp.float32)
        ssq_ref[...] += xg * xg

    @pl.when(k == pl.num_programs(1) - 1)
    def _():
        # One cross-lane (XLU) reduce + sqrt per row tile.
        out_ref[...] = jnp.sqrt(jnp.sum(ssq_ref[...], axis=1, keepdims=True))


def row_l2_norms(f, *, tile_n=None, tile_f=None):
    """Per-row L2 norms of an (N, F) array via a Pallas streaming reduction (f32 output)."""
    assert f.ndim == 2, f.shape
    n_rows, n_feat = f.shape
    itemsize = jnp.dtype(f.dtype).itemsize

    block_budget = _per_block_byte_budget()
    auto_n, auto_f = _select_tiles(n_rows, _round_up(n_feat, _LANES), itemsize, block_budget)
    tile_n = auto_n if tile_n is None else tile_n
    tile_f = auto_f if tile_f is None else tile_f

    n_pad = _round_up(n_rows, tile_n)
    f_pad = _round_up(n_feat, tile_f)
    if (n_pad, f_pad) != (n_rows, n_feat):
        # Zero padding does not change row norms; padded rows are sliced off below.
        # TODO(synk): for non-aligned shapes this is an extra HBM copy; a masked ragged edge
        # block would keep it single-pass.
        f = jnp.pad(f, ((0, n_pad - n_rows), (0, f_pad - n_feat)))

    # Scoped VMEM limit sized from the actual footprint (2x input blocks + accumulator),
    # with a floor at the default 32 MiB so larger-than-default blocks always compile.
    vmem_limit = max(2 * tile_n * tile_f * itemsize + tile_n * _LANES * 4 + 4 * 1024 * 1024,
                     32 * 1024 * 1024)

    grid = (n_pad // tile_n, f_pad // tile_f)
    norms = pl.pallas_call(
        functools.partial(_row_sq_norm_kernel, lane_groups=tile_f // _LANES),
        out_shape=jax.ShapeDtypeStruct((n_pad, 1), jnp.float32),
        grid=grid,
        in_specs=[pl.BlockSpec((tile_n, tile_f), lambda i, k: (i, k))],
        out_specs=pl.BlockSpec((tile_n, 1), lambda i, k: (i, 0)),
        scratch_shapes=[pltpu.VMEM((tile_n, _LANES), jnp.float32)],
        compiler_params=pltpu.CompilerParams(
            dimension_semantics=("parallel", "arbitrary"),
            vmem_limit_bytes=int(vmem_limit),
        ),
    )(f)
    return norms[:n_rows, 0]


@functools.partial(jax.custom_vjp, nondiff_argnums=(1,))
def adaptive_feature_norm(f, delta):
    """loss = mean((||f||_2 - (stop_gradient(||f||_2) + delta)) ** 2).

    The residual is identically -delta, so the forward value is the constant delta**2; the
    non-differentiated (eval/logging) path therefore skips the HBM pass entirely.  All
    data-dependent work lives in the VJP below.
    """
    del f
    return jnp.asarray(float(delta) ** 2, dtype=jnp.float32)


def _afn_fwd(f, delta):
    norms = row_l2_norms(f)                             # Pallas kernel: the only HBM pass
    loss = jnp.asarray(float(delta) ** 2, dtype=jnp.float32)
    return loss, (f, norms)


def _afn_bwd(delta, res, g):
    f, norms = res
    n_rows = f.shape[0]
    # Analytic SAFN gradient: d loss / d f_i = -(2 * delta / N) * f_i / ||f_i||.
    # (Zero-norm rows are clamped to grad 0 instead of the NaN autodiff would produce.)
    scale = (g * (-2.0 * float(delta) / n_rows)) / jnp.maximum(norms, 1e-12)
    grad_f = (f.astype(jnp.float32) * scale[:, None]).astype(f.dtype)
    return (grad_f,)


adaptive_feature_norm.defvjp(_afn_fwd, _afn_bwd)


def adaptive_feature_norm_ref(f, delta):
    """Pure-JAX reference mirroring the PyTorch forward."""
    norm = jnp.linalg.norm(f.astype(jnp.float32), axis=1)
    radius = jax.lax.stop_gradient(norm) + delta
    return jnp.mean((norm - radius) ** 2)


if __name__ == "__main__":
    key = jax.random.PRNGKey(0)
    delta = 1.0

    # (32, 1000) matches the PyTorch docstring example (non-lane-aligned F exercises the
    # padding path); (64, 512) exercises aligned full-width tiles and the >=2-row-tile
    # megacore split; bf16 exercises half-width streaming with f32 accumulation.
    cases = [((32, 1000), jnp.float32), ((64, 512), jnp.float32), ((64, 512), jnp.bfloat16)]
    for shape, dtype in cases:
        key, sub = jax.random.split(key)
        f = jax.random.normal(sub, shape, dtype=jnp.float32).astype(dtype)

        # Kernel path: per-row norms (the only data-dependent quantity).
        norms = jax.block_until_ready(row_l2_norms(f))
        ref_norms = jnp.linalg.norm(f.astype(jnp.float32), axis=1)
        assert jnp.allclose(norms, ref_norms, atol=1e-3, rtol=1e-4), (shape, dtype)

        loss = jax.block_until_ready(adaptive_feature_norm(f, delta))
        ref = jax.block_until_ready(adaptive_feature_norm_ref(f, delta))
        assert jnp.allclose(loss, ref, atol=1e-4, rtol=1e-5), (shape, dtype, loss, ref)

    # Gradient check: Pallas forward + analytic custom_vjp vs autodiff of the pure-JAX reference.
    f32 = jax.random.normal(jax.random.PRNGKey(1), (32, 1000), dtype=jnp.float32)
    g_kernel = jax.block_until_ready(jax.grad(lambda x: adaptive_feature_norm(x, delta))(f32))
    g_ref = jax.grad(lambda x: adaptive_feature_norm_ref(x, delta))(f32)
    assert jnp.allclose(g_kernel, g_ref, atol=1e-5, rtol=1e-4), "gradient mismatch"

    print("KERNEL_OK")
</pallas_src>

<mosaic_0001>
module attributes {stable_mosaic.version = 11 : i64} {
  func.func @_row_sq_norm_kernel(%arg0: i32, %arg1: i32, %arg2: memref<16x1024xf32, #tpu.memory_space<vmem>>, %arg3: memref<16x1xf32, #tpu.memory_space<vmem>>, %arg4: memref<16x128xf32, #tpu.memory_space<vmem>>) attributes {dimension_semantics = [#tpu.dimension_semantics<parallel>, #tpu.dimension_semantics<arbitrary>], iteration_bounds = array<i64: 2, 1>, scalar_prefetch = 0 : i64, scratch_operands = 1 : i64, tpu.core_type = #tpu.core_type<tc>, window_params = [{transform_indices = @transform_0, window_bounds = array<i64: 16, 1024>}, {transform_indices = @transform_1, window_bounds = array<i64: 16, 1>}]} {
    %c0_i32 = arith.constant 0 : i32
    %0 = arith.cmpi eq, %arg1, %c0_i32 : i32
    %1 = arith.extui %0 : i1 to i32
    %c0_i32_0 = arith.constant 0 : i32
    %2 = arith.cmpi ne, %1, %c0_i32_0 : i32
    scf.if %2 {
      %cst = arith.constant 0.000000e+00 : f32
      %46 = vector.broadcast %cst : f32 to vector<16x128xf32>
      %c0_43 = arith.constant 0 : index
      %c0_44 = arith.constant 0 : index
      %47 = vector.load %arg4[%c0_43, %c0_44] : memref<16x128xf32, #tpu.memory_space<vmem>>, vector<16x128xf32>
      tpu.vector_store %arg4[%c0_43, %c0_44], %46 {strides = array<i32>} : memref<16x128xf32, #tpu.memory_space<vmem>>, vector<16x128xf32>,
    } else {
    }
    %c0 = arith.constant 0 : index
    %c0_1 = arith.constant 0 : index
    %3 = vector.load %arg2[%c0, %c0_1] : memref<16x1024xf32, #tpu.memory_space<vmem>>, vector<16x128xf32>
    %c0_2 = arith.constant 0 : index
    %c0_3 = arith.constant 0 : index
    %4 = vector.load %arg4[%c0_2, %c0_3] : memref<16x128xf32, #tpu.memory_space<vmem>>, vector<16x128xf32>
    %5 = arith.mulf %3, %3 : vector<16x128xf32>
    %6 = arith.addf %4, %5 : vector<16x128xf32>
    %c0_4 = arith.constant 0 : index
    %c0_5 = arith.constant 0 : index
    %7 = vector.load %arg4[%c0_4, %c0_5] : memref<16x128xf32, #tpu.memory_space<vmem>>, vector<16x128xf32>
    tpu.vector_store %arg4[%c0_4, %c0_5], %6 {strides = array<i32>} : memref<16x128xf32, #tpu.memory_space<vmem>>, vector<16x128xf32>,
    %c0_6 = arith.constant 0 : index
    %c128 = arith.constant 128 : index
    %8 = vector.load %arg2[%c0_6, %c128] : memref<16x1024xf32, #tpu.memory_space<vmem>>, vector<16x128xf32>
    %c0_7 = arith.constant 0 : index
    %c0_8 = arith.constant 0 : index
    %9 = vector.load %arg4[%c0_7, %c0_8] : memref<16x128xf32, #tpu.memory_space<vmem>>, vector<16x128xf32>
    %10 = arith.mulf %8, %8 : vector<16x128xf32>
    %11 = arith.addf %9, %10 : vector<16x128xf32>
    %c0_9 = arith.constant 0 : index
    %c0_10 = arith.constant 0 : index
    %12 = vector.load %arg4[%c0_9, %c0_10] : memref<16x128xf32, #tpu.memory_space<vmem>>, vector<16x128xf32>
    tpu.vector_store %arg4[%c0_9, %c0_10], %11 {strides = array<i32>} : memref<16x128xf32, #tpu.memory_space<vmem>>, vector<16x128xf32>,
    %c0_11 = arith.constant 0 : index
    %c256 = arith.constant 256 : index
    %13 = vector.load %arg2[%c0_11, %c256] : memref<16x1024xf32, #tpu.memory_space<vmem>>, vector<16x128xf32>
    %c0_12 = arith.constant 0 : index
    %c0_13 = arith.constant 0 : index
    %14 = vector.load %arg4[%c0_12, %c0_13] : memref<16x128xf32, #tpu.memory_space<vmem>>, vector<16x128xf32>
    %15 = arith.mulf %13, %13 : vector<16x128xf32>
    %16 = arith.addf %14, %15 : vector<16x128xf32>
    %c0_14 = arith.constant 0 : index
    %c0_15 = arith.constant 0 : index
    %17 = vector.load %arg4[%c0_14, %c0_15] : memref<16x128xf32, #tpu.memory_space<vmem>>, vector<16x128xf32>
    tpu.vector_store %arg4[%c0_14, %c0_15], %16 {strides = array<i32>} : memref<16x128xf32, #tpu.memory_space<vmem>>, vector<16x128xf32>,
    %c0_16 = arith.constant 0 : index
    %c384 = arith.constant 384 : index
    %18 = vector.load %arg2[%c0_16, %c384] : memref<16x1024xf32, #tpu.memory_space<vmem>>, vector<16x128xf32>
    %c0_17 = arith.constant 0 : index
    %c0_18 = arith.constant 0 : index
    %19 = vector.load %arg4[%c0_17, %c0_18] : memref<16x128xf32, #tpu.memory_space<vmem>>, vector<16x128xf32>
    %20 = arith.mulf %18, %18 : vector<16x128xf32>
    %21 = arith.addf %19, %20 : vector<16x128xf32>
    %c0_19 = arith.constant 0 : index
    %c0_20 = arith.constant 0 : index
    %22 = vector.load %arg4[%c0_19, %c0_20] : memref<16x128xf32, #tpu.memory_space<vmem>>, vector<16x128xf32>
    tpu.vector_store %arg4[%c0_19, %c0_20], %21 {strides = array<i32>} : memref<16x128xf32, #tpu.memory_space<vmem>>, vector<16x128xf32>,
    %c0_21 = arith.constant 0 : index
    %c512 = arith.constant 512 : index
    %23 = vector.load %arg2[%c0_21, %c512] : memref<16x1024xf32, #tpu.memory_space<vmem>>, vector<16x128xf32>
    %c0_22 = arith.constant 0 : index
    %c0_23 = arith.constant 0 : index
    %24 = vector.load %arg4[%c0_22, %c0_23] : memref<16x128xf32, #tpu.memory_space<vmem>>, vector<16x128xf32>
    %25 = arith.mulf %23, %23 : vector<16x128xf32>
    %26 = arith.addf %24, %25 : vector<16x128xf32>
    %c0_24 = arith.constant 0 : index
    %c0_25 = arith.constant 0 : index
    %27 = vector.load %arg4[%c0_24, %c0_25] : memref<16x128xf32, #tpu.memory_space<vmem>>, vector<16x128xf32>
    tpu.vector_store %arg4[%c0_24, %c0_25], %26 {strides = array<i32>} : memref<16x128xf32, #tpu.memory_space<vmem>>, vector<16x128xf32>,
    %c0_26 = arith.constant 0 : index
    %c640 = arith.constant 640 : index
    %28 = vector.load %arg2[%c0_26, %c640] : memref<16x1024xf32, #tpu.memory_space<vmem>>, vector<16x128xf32>
    %c0_27 = arith.constant 0 : index
    %c0_28 = arith.constant 0 : index
    %29 = vector.load %arg4[%c0_27, %c0_28] : memref<16x128xf32, #tpu.memory_space<vmem>>, vector<16x128xf32>
    %30 = arith.mulf %28, %28 : vector<16x128xf32>
    %31 = arith.addf %29, %30 : vector<16x128xf32>
    %c0_29 = arith.constant 0 : index
    %c0_30 = arith.constant 0 : index
    %32 = vector.load %arg4[%c0_29, %c0_30] : memref<16x128xf32, #tpu.memory_space<vmem>>, vector<16x128xf32>
    tpu.vector_store %arg4[%c0_29, %c0_30], %31 {strides = array<i32>} : memref<16x128xf32, #tpu.memory_space<vmem>>, vector<16x128xf32>,
    %c0_31 = arith.constant 0 : index
    %c768 = arith.constant 768 : index
    %33 = vector.load %arg2[%c0_31, %c768] : memref<16x1024xf32, #tpu.memory_space<vmem>>, vector<16x128xf32>
    %c0_32 = arith.constant 0 : index
    %c0_33 = arith.constant 0 : index
    %34 = vector.load %arg4[%c0_32, %c0_33] : memref<16x128xf32, #tpu.memory_space<vmem>>, vector<16x128xf32>
    %35 = arith.mulf %33, %33 : vector<16x128xf32>
    %36 = arith.addf %34, %35 : vector<16x128xf32>
    %c0_34 = arith.constant 0 : index
    %c0_35 = arith.constant 0 : index
    %37 = vector.load %arg4[%c0_34, %c0_35] : memref<16x128xf32, #tpu.memory_space<vmem>>, vector<16x128xf32>
    tpu.vector_store %arg4[%c0_34, %c0_35], %36 {strides = array<i32>} : memref<16x128xf32, #tpu.memory_space<vmem>>, vector<16x128xf32>,
    %c0_36 = arith.constant 0 : index
    %c896 = arith.constant 896 : index
    %38 = vector.load %arg2[%c0_36, %c896] : memref<16x1024xf32, #tpu.memory_space<vmem>>, vector<16x128xf32>
    %c0_37 = arith.constant 0 : index
    %c0_38 = arith.constant 0 : index
    %39 = vector.load %arg4[%c0_37, %c0_38] : memref<16x128xf32, #tpu.memory_space<vmem>>, vector<16x128xf32>
    %40 = arith.mulf %38, %38 : vector<16x128xf32>
    %41 = arith.addf %39, %40 : vector<16x128xf32>
    %c0_39 = arith.constant 0 : index
    %c0_40 = arith.constant 0 : index
    %42 = vector.load %arg4[%c0_39, %c0_40] : memref<16x128xf32, #tpu.memory_space<vmem>>, vector<16x128xf32>
    tpu.vector_store %arg4[%c0_39, %c0_40], %41 {strides = array<i32>} : memref<16x128xf32, #tpu.memory_space<vmem>>, vector<16x128xf32>,
    %c0_i32_41 = arith.constant 0 : i32
    %43 = arith.cmpi eq, %arg1, %c0_i32_41 : i32
    %44 = arith.extui %43 : i1 to i32
    %c0_i32_42 = arith.constant 0 : i32
    %45 = arith.cmpi ne, %44, %c0_i32_42 : i32
    scf.if %45 {
      %c0_43 = arith.constant 0 : index
      %c0_44 = arith.constant 0 : index
      %46 = vector.load %arg4[%c0_43, %c0_44] : memref<16x128xf32, #tpu.memory_space<vmem>>, vector<16x128xf32>
      %cst = arith.constant dense<0.000000e+00> : vector<16xf32>
      %47 = vector.multi_reduction <add>, %46, %cst [1] : vector<16x128xf32> to vector<16xf32>
      %48 = vector.shape_cast %47 : vector<16xf32> to vector<16x1xf32>
      %49 = math.sqrt %48 : vector<16x1xf32>
      %c0_45 = arith.constant 0 : index
      %c0_46 = arith.constant 0 : index
      %50 = vector.load %arg3[%c0_45, %c0_46] : memref<16x1xf32, #tpu.memory_space<vmem>>, vector<16x1xf32>
      tpu.vector_store %arg3[%c0_45, %c0_46], %49 {strides = array<i32>} : memref<16x1xf32, #tpu.memory_space<vmem>>, vector<16x1xf32>,
    } else {
    }
    return
  }
  func.func @transform_0(%arg0: i32, %arg1: i32) -> (i32, i32) {
    %c0_i32 = arith.constant 0 : i32
    return %arg0, %arg1 : i32, i32
  }
  func.func @transform_1(%arg0: i32, %arg1: i32) -> (i32, i32) {
    %c0_i32 = arith.constant 0 : i32
    %c0_i32_0 = arith.constant 0 : i32
    return %arg0, %c0_i32 : i32, i32
  }
}

</mosaic_0001>

<bundles_post_ra>
// kernel: tpu_custom_call.1
= control target key start
LH: loop header
LB: loop body
LE: loop exit
PB: predicated region body
PF: predicated region fallthrough
CT: control target
= control target key end

     0   :  { %6 = vsyncpa [#allocation4], 0  ;;  %s661_s0 = inlined_call_operand.hbm [shape: f32[32,1024], index: 0, kind: input, shape index: {}]   ;;  %s662_s1 = inlined_call_operand.vmem [shape: f32[32,1], index: 1, kind: output, shape index: {}]  }
   0x1   :  { %8 = vsyncpa [#allocation4 + $0x1], 0  ;;  %s520_s6 = smov 0   ;;  %s522_s7 = smov 0  }
   0x2   :  { %s524_s8 = smov 0   ;;  %s526_s9 = smov 0  }
   0x3   :  { %s528_s10 = smov 0   ;;  %s530_s11 = smov 0  }
   0x4 LB: > { %s348_s12 = sadd.s32 4294967295, %s505_s11   ;;  %s26_s13 = sadd.s32 1, %s501_s10  ;;  %s505_s11 = sphi %s530_s11, %s14_s11   ;;  %s501_s10 = sphi %s528_s10, %s670_s10   ;;  %s497_s9 = sphi %s526_s9, %s669_s9   ;;  %s493_s8 = sphi %s524_s8, %s668_s8   ;;  %s489_s7 = sphi %s522_s7, %s667_s7   ;;  %s485_s6 = sphi %s520_s6, %s666_s6  }
   0x5   : > { %p28_p0 = scmp.ge.s32.totalorder %s26_s13, 2  ;;  %s35_s14 = sadd.s32 1, %s493_s8 }
   0x6   : > { %p42_p1 = scmp.ne.s32.totalorder %s493_s8, %s489_s7  ;;  %p43_p2 = scmp.eq.s32.totalorder %s505_s11, 0 }
   0x7   : > { %s672_s13 = smov (%p28_p0, %s26_s13), 0  ;;  %p48_p4 = scmp.ne.s32.totalorder %s489_s7, %s485_s6 }
   0x8   : > { %p556_p3 = por %p43_p2, %p42_p1  ;;  %s30_s16 = ssub.s32 %s501_s10, %s672_s13 }
   0x9   : > { %p49_p5 = scmp.eq.s32.totalorder %s348_s12, 0  ;;  %p33_p6 = scmp.eq.s32.totalorder %s30_s16, 0 }
   0xa   : > { %p370_p8 = scmp.lt.s32.totalorder %s505_s11, 2  ;;  %s98_s19 = sand.u32 1, %s493_s8  }
   0xb   : > { %p563_p7 = por %p49_p5, %p48_p4  ;;  %s363_s20 = sshll.u32 %s501_s10, 11 }
   0xc   : > { %s569_s18 = scalar_select %p33_p6, %s493_s8, %s35_s14  }
   0xd   : > { %s352_s21 = sshll.u32 %s98_s19, 7  ;;  %s576_s24 = scalar_lea.hbm %s661_s0, %s363_s20 }
   0xe   : > { %s102_s25 = scalar_lea.vmem [#allocation3], %s352_s21  ;;  %p580_p9 = pnand %p370_p8, %p556_p3 }
   0xf   : > { %s112_s26 = sshll.u32 %s102_s25, 4  ;;  %s586_s28 = scalar_lea.sflag [#allocation4], %s98_s19  ;;  %s584_s26 = int_to_ptr.vmem [resolvable:$true] %s112_s26 }
  0x10   : > { %s425_s29 = scalar_lea.hbm %s576_s24, 2048  ;;  %p427_p11 = pneg %p580_p9 }
  0x11   : > { %p426_p10 = scmp.ne.s32.totalorder %s576_s24, %s425_s29  ;;  %s430_s3 = scalar_lea.hbm %s661_s0, 4096 }
  0x12   : > { %p431_p0 = scmp.lt.u32.totalorder %s576_s24, %s661_s0  ;;  %p432_p1 = scmp.lt.u32.totalorder %s430_s3, %s425_s29 }
  0x13   : > { %p428_p12 = pnand %p427_p11, %p426_p10  ;;  %p434_p3 = scmp.lt.u32.totalorder %s425_s29, %s576_s24 }
  0x14   : > { %p433_p2 = por %p432_p1, %p431_p0 }
  0x15   : > { %p429_p13 = pneg %p428_p12 }
  0x16   : > { %p435_p4 = por %p434_p3, %p433_p2 }
  0x18   : > { %p436_p5 = pnand %p435_p4, %p429_p13 }
  0x1a   : > { %439 = shalt.err (!%p436_p5)
}
  0x1b   : > { %s440_s6 = scalar_lea.vmem %s584_s26, 2048  ;;  %s507_s12 = smov [#allocation3]  }
  0x1c   : > { %p441_p6 = scmp.ne.s32.totalorder %s584_s26, %s440_s6  ;;  %s445_s14 = sshll.u32 %s507_s12, 4  ;;  %s446_s14 = int_to_ptr.vmem [resolvable:$false] %s445_s14 }
  0x1d   : > { %s447_s15 = scalar_lea.vmem %s446_s14, 4096  ;;  %p448_p12 = scmp.lt.s32.totalorder %s584_s26, %s446_s14 }
  0x1e   : > { %p443_p8 = pnand %p441_p6, %p427_p11  ;;  %p449_p0 = scmp.lt.s32.totalorder %s447_s15, %s440_s6 }
  0x20   : > { %p444_p10 = pneg %p443_p8  ;;  %p450_p1 = por %p449_p0, %p448_p12 }
  0x22   : > { %p451_p2 = pnand %p450_p1, %p444_p10 }
  0x24   : > { %454 = shalt.err (!%p451_p2)
}
  0x25   : > { %s508_s16 = smov 1024   ;;  %s509_s19 = smov 64  }
  0x26   : > { %369 = dma.hbm_to_vmem [thread:$0]  (!%p580_p9), %s576_s24, 2048, %s584_s26, %s586_s28, %s508_s16, %s508_s16, %s509_s19  }
  0x27   : > { %p356_p11 = scmp.ge.s32.totalorder %s505_s11, 1  ;;  %p120_p13 = scmp.lt.s32.totalorder %s505_s11, 3 }
  0x29   : > { %p121_p3 = pnand %p356_p11, %p120_p13 }
  0x2a   : > { %s126_s20 = sand.u32 (!%p121_p3), 1, %s489_s7  }
  0x2b   : > { %124 = sbr.rel (%p121_p3) target bundleno = 230 (0xe6), region = 24  ;;  %s357_s21 = sshll.u32 (!%p121_p3), %s126_s20, 7 }
  0x2c   : > { %s127_s22 = scalar_lea.sflag (!%p121_p3), [#allocation4], %s126_s20  ;;  %s617_s23 = scalar_lea.vmem (!%p121_p3), [#allocation3], %s357_s21 }
  0x32   : > { %480 = dma.done.wait (%p563_p7), %s127_s22, 2048  }
  0x33   : > { %482 = vsyncadd (%p563_p7), %s127_s22, 4294965248  ;;  %v163_v0 = vld [vmem:[%s617_s23] sm:$0xff]  ;;  %v173_v1 = vld [vmem:[%s617_s23 + $0x8] sm:$0xff]  ;;  %s358_s17 = sshll.u32 %s497_s9, 1  ;;  %vm266_vm0 = vcmask 7168  }
  0x34   : > { %v183_v2 = vld [vmem:[%s617_s23 + $0x10] sm:$0xff]  ;;  %v167_v3 = vmul.f32 %v163_v0, %v163_v0  ;;  %v177_v4 = vmul.f32 %v173_v1, %v173_v1  ;;  %v193_v6 = vld [vmem:[%s617_s23 + $0x18] sm:$0xff]  ;;  %v203_v7 = vld [vmem:[%s617_s23 + $0x20] sm:$0xff]  ;;  %p152_p7 = scmp.lt.s32.totalorder %s358_s17, 3 }
  0x35   : > { %v187_v5 = vmul.f32 %v183_v2, %v183_v2  ;;  %v164_v8 = vld [vmem:[%s617_s23 + $0x40] sm:$0xff]  ;;  %v197_v10 = vmul.f32 %v193_v6, %v193_v6  ;;  %v174_v12 = vld [vmem:[%s617_s23 + $0x48] sm:$0xff]  ;;  %v184_v13 = vld [vmem:[%s617_s23 + $0x50] sm:$0xff]  ;;  %v207_v19 = vmul.f32 %v203_v7, %v203_v7 }
  0x36   : > { %v179_v9 = vadd.f32 %v177_v4, %v167_v3  ;;  %v168_v11 = vmul.f32 %v164_v8, %v164_v8  ;;  %v194_v14 = vld [vmem:[%s617_s23 + $0x58] sm:$0xff]  ;;  %v213_v15 = vld [vmem:[%s617_s23 + $0x28] sm:$0xff]  ;;  %v178_v16 = vmul.f32 %v174_v12, %v174_v12  ;;  %v188_v17 = vmul.f32 %v184_v13, %v184_v13  ;;  %v204_v20 = vld [vmem:[%s617_s23 + $0x60] sm:$0xff]  ;;  %s674_s17 = smov (!%p152_p7, %s358_s17), 3 }
  0x37   : > { %v223_v21 = vld [vmem:[%s617_s23 + $0x30] sm:$0xff]  ;;  %v198_v23 = vmul.f32 %v194_v14, %v194_v14  ;;  %v217_v25 = vmul.f32 %v213_v15, %v213_v15  ;;  %v214_v26 = vld [vmem:[%s617_s23 + $0x68] sm:$0xff]  ;;  %v233_v27 = vld [vmem:[%s617_s23 + $0x38] sm:$0xff]  ;;  %v208_v29 = vmul.f32 %v204_v20, %v204_v20  ;;  %s359_s24 = sshll.u32 %s674_s17, 3 }
  0x38   : > { %v189_v18 = vadd.f32 %v187_v5, %v179_v9  ;;  %v180_v22 = vadd.f32 %v178_v16, %v168_v11  ;;  %v227_v31 = vmul.f32 %v223_v21, %v223_v21  ;;  %v224_v32 = vld [vmem:[%s617_s23 + $0x70] sm:$0xff]  ;;  %v218_v34 = vmul.f32 %v214_v26, %v214_v26  ;;  %v234_v37 = vld [vmem:[%s617_s23 + $0x78] sm:$0xff]  ;;  %s155_s27 = scalar_lea.vmem %s662_s1, %s359_s24 }
  0x39   : > { %v237_v36 = vmul.f32 %v233_v27, %v233_v27  ;;  %v228_v39 = vmul.f32 %v224_v32, %v224_v32  ;;  %v238_v42 = vmul.f32 %v234_v37, %v234_v37 }
  0x3a   : > { %v199_v24 = vadd.f32 %v197_v10, %v189_v18  ;;  %v190_v28 = vadd.f32 %v188_v17, %v180_v22 }
  0x3c   : > { %v209_v30 = vadd.f32 %v207_v19, %v199_v24  ;;  %v200_v33 = vadd.f32 %v198_v23, %v190_v28 }
  0x3e   : > { %v219_v35 = vadd.f32 %v217_v25, %v209_v30  ;;  %v210_v38 = vadd.f32 %v208_v29, %v200_v33 }
  0x40   : > { %v229_v40 = vadd.f32 %v227_v31, %v219_v35  ;;  %v220_v41 = vadd.f32 %v218_v34, %v210_v38 }
  0x42   : > { %v239_v43 = vadd.f32 %v237_v36, %v229_v40  ;;  %v230_v44 = vadd.f32 %v228_v39, %v220_v41 }
  0x44   : > { %248 = vadd.xlane.f32.xlu0 %v239_v43  ;;  %v240_v45 = vadd.f32 %v238_v42, %v230_v44 }
  0x48   : > { %250 = vadd.xlane.f32.xlu0 %v240_v45 }
  0xd1   : > { %v249_v46 = vpop.xlane.xlu0 %248 }
  0xd2   : > { %421 = vrsqrt.f32 %v249_v46  ;;  %vm254_vm1 = vcmp.eq.f32.partialorder %v249_v46, inf  ;;  %v257_v50 = vand.u32 2147483648, %v249_v46  ;;  %vm256_vm2 = vcmp.eq.f32.partialorder %v249_v46, 0.0 }
  0xd5   : > { %v251_v47 = vpop.xlane.xlu0 %250 }
  0xd6   : > { %423 = vrsqrt.f32 %v251_v47  ;;  %vm261_vm3 = vcmp.eq.f32.partialorder %v251_v47, inf  ;;  %v264_v55 = vand.u32 2147483648, %v251_v47  ;;  %vm263_vm4 = vcmp.eq.f32.partialorder %v251_v47, 0.0 }
  0xdc   : > { %v422_v48 = vpop.eup %421 }
  0xdd   : > { %v253_v49 = vmul.f32 %v422_v48, %v249_v46 }
  0xdf   : > { %v255_v51 = vsel %vm254_vm1, %v249_v46, %v253_v49 }
  0xe0   : > { %v424_v52 = vpop.eup %423  ;;  %v258_v53 = vsel %vm256_vm2, %v257_v50, %v255_v51 }
  0xe1   : > { %267 = vst.msk [vmem:[%s155_s27] sm:$0xff] %vm266_vm0, %v258_v53  ;;  %v260_v54 = vmul.f32 %v424_v52, %v251_v47 }
  0xe3   : > { %v262_v56 = vsel %vm261_vm3, %v251_v47, %v260_v54 }
  0xe4   : > { %v265_v57 = vsel %vm263_vm4, %v264_v55, %v262_v56 }
  0xe5   : > { %268 = vst.msk [vmem:[%s155_s27 + $0x8] sm:$0xff] %vm266_vm0, %v265_v57 }
  0xe6 PF: > { %s14_s11 = sadd.s32 1, %s505_s11   ;;  %s666_s6 = smov %s489_s7 }
  0xe7   : > { %p11_p9 = scmp.ge.s32.totalorder %s14_s11, 4   ;;  %s667_s7 = smov %s493_s8 }
  0xe8   : > { %s668_s8 = smov %s569_s18  ;;  %s669_s9 = smov %s501_s10 }
  0xe9   : > { %s670_s10 = smov %s672_s13  ;;  %13 = sbr.rel (!%p11_p9) target bundleno = 4 (0x4), region = 72 }
  0xf0   :  { %291 = vsyncpa [#allocation4], 1 }
  0xf1   :  { %293 = vsyncpa [#allocation4 + $0x1], 1 }

</bundles_post_ra>
